<compile_context>
chip_gen: v7x
topology: tpu7x:2x2x1
jax: 0.10.0
libtpu: 0.0.40
codegen_flags: <defaults>
</compile_context>

<pallas_src>
import functools

import jax
import jax.numpy as jnp
from jax.experimental import pallas as pl
from jax.experimental.pallas import tpu as pltpu

INPUT_SIZE = 2
HIDDEN_SIZE = 63
HIDDEN_PAD = 128        # lane-aligned hidden dim


def rnn_kernel(x_ref, whh_ref, misc_ref, out_ref, *, T):
    """Forward pass for one batch tile.

    x_ref:    (BT, 2*T) f32   cols [0:T] = feature 0, cols [T:2T] = feature 1
    whh_ref:  (Hp, Hp)  bf16  zero-padded W_hh^T
    misc_ref: (8, Hp)   f32   row0/1 = W_ih^T rows, row2 = b_ih+b_hh,
                              row3 = fc weight, row4 = fc bias (broadcast)
    out_ref:  (BT, 1)   f32   sigmoid(fc(relu(h_T)))
    """
    wih0 = misc_ref[0:1, :]          # (1, Hp)
    wih1 = misc_ref[1:2, :]          # (1, Hp)
    bias = misc_ref[2:3, :]          # (1, Hp)   b_ih + b_hh (padded cols = 0)
    wfc = misc_ref[3:4, :]           # (1, Hp)
    bfc = misc_ref[4:5, 0:1]         # (1, 1)

    xk = x_ref[...]                  # (BT, 2T) f32
    whh = whh_ref[...]               # (Hp, Hp) bf16
    BT = xk.shape[0]
    Hp = whh.shape[0]

    # Input projection: K = I = 2 would waste an MXU pass, so do it as two VPU
    # broadcast-FMAs per step, hoisted off the serial recurrence path.
    xw = [bias + xk[:, t:t + 1] * wih0 + xk[:, T + t:T + t + 1] * wih1
          for t in range(T)]         # each (BT, Hp), padded cols exactly 0

    # Serial recurrence (fully unrolled, T small/static). Only h @ W_hh^T + tanh
    # stays on the critical path. bf16 inputs + f32 accumulation -> single-pass MXU.
    # Step 0: h0 == 0, skip the matmul.
    h = jnp.tanh(xw[0])              # (BT, Hp) f32, padded cols stay 0
    for t in range(1, T):
        hw = jnp.dot(h.astype(jnp.bfloat16), whh,
                     preferred_element_type=jnp.float32)
        h = jnp.tanh(xw[t] + hw)
    # TODO(synk): hold W_hh resident in the MXU across steps via
    # pltpu.matmul_push_rhs / matmul_acc_lhs / matmul_pop ("same RHS, many LHS")
    # to avoid re-streaming the 128x128 weight tile every step.
    # TODO(synk): for large T, switch to lax.fori_loop with xw staged in a VMEM
    # scratch and stream x chunks sized for v7x's 64 MiB VMEM (set
    # vmem_limit_bytes explicitly) instead of keeping the sequence unrolled.

    # Head: ReLU -> Linear(63, 1) as a lane reduction (no N=1 MXU round trip)
    # -> Sigmoid.  Output stays (BT, 1); at BT <= 128 the masked store is a
    # handful of elements and a lane-dense relayout would cost more than it saves.
    h_relu = jnp.maximum(h, 0.0)
    logit = jnp.sum(h_relu * wfc, axis=-1, keepdims=True) + bfc
    out_ref[...] = jax.nn.sigmoid(logit)


def init_params(key):
    """Deterministic init mirroring PyTorch default shapes/ranges."""
    ks = jax.random.split(key, 6)
    H, I = HIDDEN_SIZE, INPUT_SIZE
    bound = 1.0 / jnp.sqrt(H)
    w_ih = jax.random.uniform(ks[0], (H, I), jnp.float32, -bound, bound)
    w_hh = jax.random.uniform(ks[1], (H, H), jnp.float32, -bound, bound)
    b_ih = jax.random.uniform(ks[2], (H,), jnp.float32, -bound, bound)
    b_hh = jax.random.uniform(ks[3], (H,), jnp.float32, -bound, bound)
    w_fc = jax.random.uniform(ks[4], (1, H), jnp.float32, -bound, bound)
    b_fc = jax.random.uniform(ks[5], (1,), jnp.float32, -bound, bound)
    return dict(w_ih=w_ih, w_hh=w_hh, b_ih=b_ih, b_hh=b_hh, w_fc=w_fc, b_fc=b_fc)


def pack_params(params):
    """Build the padded/packed kernel operands ONCE (cache outside the hot path)."""
    H, Hp = HIDDEN_SIZE, HIDDEN_PAD
    wih_t = params["w_ih"].T.astype(jnp.float32)                       # (2, H)
    misc = jnp.zeros((8, Hp), jnp.float32)
    misc = misc.at[0, :H].set(wih_t[0])
    misc = misc.at[1, :H].set(wih_t[1])
    misc = misc.at[2, :H].set((params["b_ih"] + params["b_hh"]).astype(jnp.float32))
    misc = misc.at[3, :H].set(params["w_fc"][0].astype(jnp.float32))
    misc = misc.at[4, :].set(params["b_fc"][0].astype(jnp.float32))
    whh_t = jnp.zeros((Hp, Hp), jnp.bfloat16).at[:H, :H].set(
        params["w_hh"].T.astype(jnp.bfloat16))
    return dict(whh_t=whh_t, misc=misc)


def rnn_forward(x, packed):
    """x: (B, T, 2) batch_first like PyTorch nn.RNN. Returns (B, 1)."""
    B, T, I = x.shape
    assert I == INPUT_SIZE
    Hp = HIDDEN_PAD

    # Sublane-aligned batch tile, capped at 128 rows per MXU pass; larger batches
    # tile over a parallel grid axis (sharded across TensorCores on v7x).
    BT = min(128, max(8, ((B + 7) // 8) * 8))
    n_tiles = pl.cdiv(B, BT)
    Bp = n_tiles * BT

    x_p = jnp.pad(x.astype(jnp.float32), ((0, Bp - B), (0, 0), (0, 0)))  # (Bp, T, 2)
    # Feature-major packing: cols [0:T] = feature 0, [T:2T] = feature 1.
    x_pack = jnp.concatenate([x_p[:, :, 0], x_p[:, :, 1]], axis=1)       # (Bp, 2T)

    out_padded = pl.pallas_call(
        functools.partial(rnn_kernel, T=T),
        grid=(n_tiles,),
        out_shape=jax.ShapeDtypeStruct((Bp, 1), jnp.float32),
        in_specs=[
            pl.BlockSpec((BT, 2 * T), lambda i: (i, 0)),
            pl.BlockSpec((Hp, Hp), lambda i: (0, 0)),
            pl.BlockSpec((8, Hp), lambda i: (0, 0)),
        ],
        out_specs=pl.BlockSpec((BT, 1), lambda i: (i, 0)),
        compiler_params=pltpu.CompilerParams(
            dimension_semantics=("parallel",)),
    )(x_pack, packed["whh_t"], packed["misc"])
    return out_padded[:B]


def rnn_reference(x, params):
    """Pure-JAX reference of the same forward pass."""
    B, T, I = x.shape
    H = HIDDEN_SIZE
    h = jnp.zeros((B, H), jnp.float32)
    for t in range(T):
        h = jnp.tanh(x[:, t, :] @ params["w_ih"].T + params["b_ih"]
                     + h @ params["w_hh"].T + params["b_hh"])
    h = jnp.maximum(h, 0.0)
    return jax.nn.sigmoid(h @ params["w_fc"].T + params["b_fc"])


if __name__ == "__main__":
    key = jax.random.PRNGKey(0)
    k_x, k_p = jax.random.split(key)

    B, T = 2, 8
    x = jax.random.normal(k_x, (B, T, INPUT_SIZE), dtype=jnp.float32)
    params = init_params(k_p)
    packed = pack_params(params)          # padded weights built once, reused

    forward = jax.jit(rnn_forward)
    out = forward(x, packed)
    out = jax.block_until_ready(out)

    ref = rnn_reference(x, params)
    assert out.shape == (B, 1), out.shape
    # bf16-input MXU matmul in the recurrence (f32 accumulation) vs the f32
    # reference -> compare at a tolerance that covers bf16 operand rounding.
    assert jnp.allclose(out, ref, atol=1e-2, rtol=1e-2), (out, ref)

    print("KERNEL_OK")
</pallas_src>

<mosaic_0001>
module attributes {stable_mosaic.version = 11 : i64} {
  func.func @rnn_kernel(%arg0: i32, %arg1: memref<8x16xf32, #tpu.memory_space<vmem>>, %arg2: memref<128x128xbf16, #tpu.memory_space<vmem>>, %arg3: memref<8x128xf32, #tpu.memory_space<vmem>>, %arg4: memref<8x1xf32, #tpu.memory_space<vmem>>) attributes {dimension_semantics = [#tpu.dimension_semantics<parallel>], iteration_bounds = array<i64: 1>, scalar_prefetch = 0 : i64, scratch_operands = 0 : i64, tpu.core_type = #tpu.core_type<tc>, window_params = [{transform_indices = @transform_0, window_bounds = array<i64: 8, 16>}, {pipeline_mode = #tpu.pipeline_mode<synchronous>, transform_indices = @transform_1, window_bounds = array<i64: 128, 128>}, {pipeline_mode = #tpu.pipeline_mode<synchronous>, transform_indices = @transform_2, window_bounds = array<i64: 8, 128>}, {transform_indices = @transform_3, window_bounds = array<i64: 8, 1>}]} {
    %c0 = arith.constant 0 : index
    %c0_0 = arith.constant 0 : index
    %0 = vector.load %arg3[%c0, %c0_0] : memref<8x128xf32, #tpu.memory_space<vmem>>, vector<1x128xf32>
    %c1 = arith.constant 1 : index
    %c0_1 = arith.constant 0 : index
    %1 = vector.load %arg3[%c1, %c0_1] : memref<8x128xf32, #tpu.memory_space<vmem>>, vector<1x128xf32>
    %c2 = arith.constant 2 : index
    %c0_2 = arith.constant 0 : index
    %2 = vector.load %arg3[%c2, %c0_2] : memref<8x128xf32, #tpu.memory_space<vmem>>, vector<1x128xf32>
    %c3 = arith.constant 3 : index
    %c0_3 = arith.constant 0 : index
    %3 = vector.load %arg3[%c3, %c0_3] : memref<8x128xf32, #tpu.memory_space<vmem>>, vector<1x128xf32>
    %c4 = arith.constant 4 : index
    %c0_4 = arith.constant 0 : index
    %4 = vector.load %arg3[%c4, %c0_4] : memref<8x128xf32, #tpu.memory_space<vmem>>, vector<1x1xf32>
    %c0_5 = arith.constant 0 : index
    %c0_6 = arith.constant 0 : index
    %5 = vector.load %arg1[%c0_5, %c0_6] : memref<8x16xf32, #tpu.memory_space<vmem>>, vector<8x16xf32>
    %c0_7 = arith.constant 0 : index
    %c0_8 = arith.constant 0 : index
    %6 = vector.load %arg2[%c0_7, %c0_8] : memref<128x128xbf16, #tpu.memory_space<vmem>>, vector<128x128xbf16>
    %7 = vector.extract_strided_slice %5 {offsets = [0, 0], sizes = [8, 1], strides = [1, 1]} : vector<8x16xf32> to vector<8x1xf32>
    %8 = vector.broadcast %7 : vector<8x1xf32> to vector<8x128xf32>
    %9 = vector.broadcast %0 : vector<1x128xf32> to vector<8x128xf32>
    %10 = arith.mulf %8, %9 : vector<8x128xf32>
    %11 = vector.broadcast %2 : vector<1x128xf32> to vector<8x128xf32>
    %12 = arith.addf %11, %10 : vector<8x128xf32>
    %13 = vector.extract_strided_slice %5 {offsets = [0, 8], sizes = [8, 1], strides = [1, 1]} : vector<8x16xf32> to vector<8x1xf32>
    %14 = vector.broadcast %13 : vector<8x1xf32> to vector<8x128xf32>
    %15 = vector.broadcast %1 : vector<1x128xf32> to vector<8x128xf32>
    %16 = arith.mulf %14, %15 : vector<8x128xf32>
    %17 = arith.addf %12, %16 : vector<8x128xf32>
    %18 = vector.extract_strided_slice %5 {offsets = [0, 1], sizes = [8, 1], strides = [1, 1]} : vector<8x16xf32> to vector<8x1xf32>
    %19 = vector.broadcast %18 : vector<8x1xf32> to vector<8x128xf32>
    %20 = vector.broadcast %0 : vector<1x128xf32> to vector<8x128xf32>
    %21 = arith.mulf %19, %20 : vector<8x128xf32>
    %22 = vector.broadcast %2 : vector<1x128xf32> to vector<8x128xf32>
    %23 = arith.addf %22, %21 : vector<8x128xf32>
    %24 = vector.extract_strided_slice %5 {offsets = [0, 9], sizes = [8, 1], strides = [1, 1]} : vector<8x16xf32> to vector<8x1xf32>
    %25 = vector.broadcast %24 : vector<8x1xf32> to vector<8x128xf32>
    %26 = vector.broadcast %1 : vector<1x128xf32> to vector<8x128xf32>
    %27 = arith.mulf %25, %26 : vector<8x128xf32>
    %28 = arith.addf %23, %27 : vector<8x128xf32>
    %29 = vector.extract_strided_slice %5 {offsets = [0, 2], sizes = [8, 1], strides = [1, 1]} : vector<8x16xf32> to vector<8x1xf32>
    %30 = vector.broadcast %29 : vector<8x1xf32> to vector<8x128xf32>
    %31 = vector.broadcast %0 : vector<1x128xf32> to vector<8x128xf32>
    %32 = arith.mulf %30, %31 : vector<8x128xf32>
    %33 = vector.broadcast %2 : vector<1x128xf32> to vector<8x128xf32>
    %34 = arith.addf %33, %32 : vector<8x128xf32>
    %35 = vector.extract_strided_slice %5 {offsets = [0, 10], sizes = [8, 1], strides = [1, 1]} : vector<8x16xf32> to vector<8x1xf32>
    %36 = vector.broadcast %35 : vector<8x1xf32> to vector<8x128xf32>
    %37 = vector.broadcast %1 : vector<1x128xf32> to vector<8x128xf32>
    %38 = arith.mulf %36, %37 : vector<8x128xf32>
    %39 = arith.addf %34, %38 : vector<8x128xf32>
    %40 = vector.extract_strided_slice %5 {offsets = [0, 3], sizes = [8, 1], strides = [1, 1]} : vector<8x16xf32> to vector<8x1xf32>
    %41 = vector.broadcast %40 : vector<8x1xf32> to vector<8x128xf32>
    %42 = vector.broadcast %0 : vector<1x128xf32> to vector<8x128xf32>
    %43 = arith.mulf %41, %42 : vector<8x128xf32>
    %44 = vector.broadcast %2 : vector<1x128xf32> to vector<8x128xf32>
    %45 = arith.addf %44, %43 : vector<8x128xf32>
    %46 = vector.extract_strided_slice %5 {offsets = [0, 11], sizes = [8, 1], strides = [1, 1]} : vector<8x16xf32> to vector<8x1xf32>
    %47 = vector.broadcast %46 : vector<8x1xf32> to vector<8x128xf32>
    %48 = vector.broadcast %1 : vector<1x128xf32> to vector<8x128xf32>
    %49 = arith.mulf %47, %48 : vector<8x128xf32>
    %50 = arith.addf %45, %49 : vector<8x128xf32>
    %51 = vector.extract_strided_slice %5 {offsets = [0, 4], sizes = [8, 1], strides = [1, 1]} : vector<8x16xf32> to vector<8x1xf32>
    %52 = vector.broadcast %51 : vector<8x1xf32> to vector<8x128xf32>
    %53 = vector.broadcast %0 : vector<1x128xf32> to vector<8x128xf32>
    %54 = arith.mulf %52, %53 : vector<8x128xf32>
    %55 = vector.broadcast %2 : vector<1x128xf32> to vector<8x128xf32>
    %56 = arith.addf %55, %54 : vector<8x128xf32>
    %57 = vector.extract_strided_slice %5 {offsets = [0, 12], sizes = [8, 1], strides = [1, 1]} : vector<8x16xf32> to vector<8x1xf32>
    %58 = vector.broadcast %57 : vector<8x1xf32> to vector<8x128xf32>
    %59 = vector.broadcast %1 : vector<1x128xf32> to vector<8x128xf32>
    %60 = arith.mulf %58, %59 : vector<8x128xf32>
    %61 = arith.addf %56, %60 : vector<8x128xf32>
    %62 = vector.extract_strided_slice %5 {offsets = [0, 5], sizes = [8, 1], strides = [1, 1]} : vector<8x16xf32> to vector<8x1xf32>
    %63 = vector.broadcast %62 : vector<8x1xf32> to vector<8x128xf32>
    %64 = vector.broadcast %0 : vector<1x128xf32> to vector<8x128xf32>
    %65 = arith.mulf %63, %64 : vector<8x128xf32>
    %66 = vector.broadcast %2 : vector<1x128xf32> to vector<8x128xf32>
    %67 = arith.addf %66, %65 : vector<8x128xf32>
    %68 = vector.extract_strided_slice %5 {offsets = [0, 13], sizes = [8, 1], strides = [1, 1]} : vector<8x16xf32> to vector<8x1xf32>
    %69 = vector.broadcast %68 : vector<8x1xf32> to vector<8x128xf32>
    %70 = vector.broadcast %1 : vector<1x128xf32> to vector<8x128xf32>
    %71 = arith.mulf %69, %70 : vector<8x128xf32>
    %72 = arith.addf %67, %71 : vector<8x128xf32>
    %73 = vector.extract_strided_slice %5 {offsets = [0, 6], sizes = [8, 1], strides = [1, 1]} : vector<8x16xf32> to vector<8x1xf32>
    %74 = vector.broadcast %73 : vector<8x1xf32> to vector<8x128xf32>
    %75 = vector.broadcast %0 : vector<1x128xf32> to vector<8x128xf32>
    %76 = arith.mulf %74, %75 : vector<8x128xf32>
    %77 = vector.broadcast %2 : vector<1x128xf32> to vector<8x128xf32>
    %78 = arith.addf %77, %76 : vector<8x128xf32>
    %79 = vector.extract_strided_slice %5 {offsets = [0, 14], sizes = [8, 1], strides = [1, 1]} : vector<8x16xf32> to vector<8x1xf32>
    %80 = vector.broadcast %79 : vector<8x1xf32> to vector<8x128xf32>
    %81 = vector.broadcast %1 : vector<1x128xf32> to vector<8x128xf32>
    %82 = arith.mulf %80, %81 : vector<8x128xf32>
    %83 = arith.addf %78, %82 : vector<8x128xf32>
    %84 = vector.extract_strided_slice %5 {offsets = [0, 7], sizes = [8, 1], strides = [1, 1]} : vector<8x16xf32> to vector<8x1xf32>
    %85 = vector.broadcast %84 : vector<8x1xf32> to vector<8x128xf32>
    %86 = vector.broadcast %0 : vector<1x128xf32> to vector<8x128xf32>
    %87 = arith.mulf %85, %86 : vector<8x128xf32>
    %88 = vector.broadcast %2 : vector<1x128xf32> to vector<8x128xf32>
    %89 = arith.addf %88, %87 : vector<8x128xf32>
    %90 = vector.extract_strided_slice %5 {offsets = [0, 15], sizes = [8, 1], strides = [1, 1]} : vector<8x16xf32> to vector<8x1xf32>
    %91 = vector.broadcast %90 : vector<8x1xf32> to vector<8x128xf32>
    %92 = vector.broadcast %1 : vector<1x128xf32> to vector<8x128xf32>
    %93 = arith.mulf %91, %92 : vector<8x128xf32>
    %94 = arith.addf %89, %93 : vector<8x128xf32>
    %95 = math.tanh %17 : vector<8x128xf32>
    %96 = arith.truncf %95 : vector<8x128xf32> to vector<8x128xbf16>
    %cst = arith.constant dense<0.000000e+00> : vector<8x128xf32>
    %97 = tpu.matmul %96, %6, %cst {dimension_numbers = #tpu.dot_dimension_numbers<[1], [0], [0], [1], [0, 0, 1, 1], [], []>} : vector<8x128xbf16>, vector<128x128xbf16>, vector<8x128xf32> -> vector<8x128xf32>
    %98 = arith.addf %28, %97 : vector<8x128xf32>
    %99 = math.tanh %98 : vector<8x128xf32>
    %100 = arith.truncf %99 : vector<8x128xf32> to vector<8x128xbf16>
    %cst_9 = arith.constant dense<0.000000e+00> : vector<8x128xf32>
    %101 = tpu.matmul %100, %6, %cst_9 {dimension_numbers = #tpu.dot_dimension_numbers<[1], [0], [0], [1], [0, 0, 1, 1], [], []>} : vector<8x128xbf16>, vector<128x128xbf16>, vector<8x128xf32> -> vector<8x128xf32>
    %102 = arith.addf %39, %101 : vector<8x128xf32>
    %103 = math.tanh %102 : vector<8x128xf32>
    %104 = arith.truncf %103 : vector<8x128xf32> to vector<8x128xbf16>
    %cst_10 = arith.constant dense<0.000000e+00> : vector<8x128xf32>
    %105 = tpu.matmul %104, %6, %cst_10 {dimension_numbers = #tpu.dot_dimension_numbers<[1], [0], [0], [1], [0, 0, 1, 1], [], []>} : vector<8x128xbf16>, vector<128x128xbf16>, vector<8x128xf32> -> vector<8x128xf32>
    %106 = arith.addf %50, %105 : vector<8x128xf32>
    %107 = math.tanh %106 : vector<8x128xf32>
    %108 = arith.truncf %107 : vector<8x128xf32> to vector<8x128xbf16>
    %cst_11 = arith.constant dense<0.000000e+00> : vector<8x128xf32>
    %109 = tpu.matmul %108, %6, %cst_11 {dimension_numbers = #tpu.dot_dimension_numbers<[1], [0], [0], [1], [0, 0, 1, 1], [], []>} : vector<8x128xbf16>, vector<128x128xbf16>, vector<8x128xf32> -> vector<8x128xf32>
    %110 = arith.addf %61, %109 : vector<8x128xf32>
    %111 = math.tanh %110 : vector<8x128xf32>
    %112 = arith.truncf %111 : vector<8x128xf32> to vector<8x128xbf16>
    %cst_12 = arith.constant dense<0.000000e+00> : vector<8x128xf32>
    %113 = tpu.matmul %112, %6, %cst_12 {dimension_numbers = #tpu.dot_dimension_numbers<[1], [0], [0], [1], [0, 0, 1, 1], [], []>} : vector<8x128xbf16>, vector<128x128xbf16>, vector<8x128xf32> -> vector<8x128xf32>
    %114 = arith.addf %72, %113 : vector<8x128xf32>
    %115 = math.tanh %114 : vector<8x128xf32>
    %116 = arith.truncf %115 : vector<8x128xf32> to vector<8x128xbf16>
    %cst_13 = arith.constant dense<0.000000e+00> : vector<8x128xf32>
    %117 = tpu.matmul %116, %6, %cst_13 {dimension_numbers = #tpu.dot_dimension_numbers<[1], [0], [0], [1], [0, 0, 1, 1], [], []>} : vector<8x128xbf16>, vector<128x128xbf16>, vector<8x128xf32> -> vector<8x128xf32>
    %118 = arith.addf %83, %117 : vector<8x128xf32>
    %119 = math.tanh %118 : vector<8x128xf32>
    %120 = arith.truncf %119 : vector<8x128xf32> to vector<8x128xbf16>
    %cst_14 = arith.constant dense<0.000000e+00> : vector<8x128xf32>
    %121 = tpu.matmul %120, %6, %cst_14 {dimension_numbers = #tpu.dot_dimension_numbers<[1], [0], [0], [1], [0, 0, 1, 1], [], []>} : vector<8x128xbf16>, vector<128x128xbf16>, vector<8x128xf32> -> vector<8x128xf32>
    %122 = arith.addf %94, %121 : vector<8x128xf32>
    %123 = math.tanh %122 : vector<8x128xf32>
    %cst_15 = arith.constant 0.000000e+00 : f32
    %124 = vector.broadcast %cst_15 : f32 to vector<8x128xf32>
    %125 = arith.maximumf %123, %124 : vector<8x128xf32>
    %126 = vector.broadcast %3 : vector<1x128xf32> to vector<8x128xf32>
    %127 = arith.mulf %125, %126 : vector<8x128xf32>
    %cst_16 = arith.constant dense<0.000000e+00> : vector<8xf32>
    %128 = vector.multi_reduction <add>, %127, %cst_16 [1] : vector<8x128xf32> to vector<8xf32>
    %129 = vector.shape_cast %128 : vector<8xf32> to vector<8x1xf32>
    %130 = vector.broadcast %4 : vector<1x1xf32> to vector<8x1xf32>
    %131 = arith.addf %129, %130 : vector<8x1xf32>
    %132 = arith.negf %131 : vector<8x1xf32>
    %133 = math.exp %132 : vector<8x1xf32>
    %cst_17 = arith.constant 1.000000e+00 : f32
    %134 = vector.broadcast %cst_17 : f32 to vector<8x1xf32>
    %135 = arith.addf %134, %133 : vector<8x1xf32>
    %136 = arith.divf %134, %135 : vector<8x1xf32>
    %c0_18 = arith.constant 0 : index
    %c0_19 = arith.constant 0 : index
    %137 = vector.load %arg4[%c0_18, %c0_19] : memref<8x1xf32, #tpu.memory_space<vmem>>, vector<8x1xf32>
    tpu.vector_store %arg4[%c0_18, %c0_19], %136 {strides = array<i32>} : memref<8x1xf32, #tpu.memory_space<vmem>>, vector<8x1xf32>,
    return
  }
  func.func @transform_0(%arg0: i32) -> (i32, i32) {
    %c0_i32 = arith.constant 0 : i32
    %c0_i32_0 = arith.constant 0 : i32
    return %arg0, %c0_i32 : i32, i32
  }
  func.func @transform_1(%arg0: i32) -> (i32, i32) {
    %c0_i32 = arith.constant 0 : i32
    %c0_i32_0 = arith.constant 0 : i32
    %c0_i32_1 = arith.constant 0 : i32
    return %c0_i32, %c0_i32_0 : i32, i32
  }
  func.func @transform_2(%arg0: i32) -> (i32, i32) {
    %c0_i32 = arith.constant 0 : i32
    %c0_i32_0 = arith.constant 0 : i32
    %c0_i32_1 = arith.constant 0 : i32
    return %c0_i32, %c0_i32_0 : i32, i32
  }
  func.func @transform_3(%arg0: i32) -> (i32, i32) {
    %c0_i32 = arith.constant 0 : i32
    %c0_i32_0 = arith.constant 0 : i32
    return %arg0, %c0_i32 : i32, i32
  }
}

</mosaic_0001>

<bundles_post_ra>
// kernel: rnn_forward.1
= control target key start
LH: loop header
LB: loop body
LE: loop exit
PB: predicated region body
PF: predicated region fallthrough
CT: control target
= control target key end

     0   :  { %8 = vsyncpa [#allocation3], 0  ;;  %s839_s12 = smov [#allocation2]   ;;  %s1110_s0 = inlined_call_operand.vmem [shape: f32[8,16], index: 0, kind: input, shape index: {}]   ;;  %s1111_s1 = inlined_call_operand.vmem [shape: bf16[128,128], index: 1, kind: input, shape index: {}]   ;;  %s1112_s2 = inlined_call_operand.hbm [shape: f32[8,128], index: 2, kind: input, shape index: {}]   ;;  %s1113_s3 = inlined_call_operand.vmem [shape: f32[8,1], index: 3, kind: output, shape index: {}]  }
   0x1   :  { %s19_s13 = sshll.u32 %s839_s12, 4  ;;  %s815_s16 = scalar_lea.hbm %s1112_s2, 128  ;;  %s20_s13 = int_to_ptr.vmem [resolvable:$true] %s19_s13 }
   0x2   :  { %p816_p0 = scmp.ne.s32.totalorder %s1112_s2, %s815_s16  ;;  %p819_p1 = scmp.lt.u32.totalorder %s815_s16, %s1112_s2 }
   0x4   :  { %p821_p2 = pnand %p819_p1, %p816_p0 }
   0x6   :  { %824 = shalt.err (!%p821_p2)
}
   0x7   :  { %s825_s21 = scalar_lea.vmem %s20_s13, 128  ;;  %p830_p4 = scmp.lt.s32.totalorder %s20_s13, %s20_s13 }
   0x8   :  { %p826_p3 = scmp.ne.s32.totalorder %s20_s13, %s825_s21  ;;  %p831_p5 = scmp.lt.s32.totalorder %s825_s21, %s825_s21 }
   0xa   :  { %p832_p6 = por %p831_p5, %p830_p4 }
   0xc   :  { %p833_p7 = pnand %p832_p6, %p826_p3 }
   0xe   :  { %836 = shalt.err (!%p833_p7)
}
   0xf   :  { %22 = dma.hbm_to_vmem [thread:$0]  %s1112_s2, 128, %s20_s13, [#allocation3]  }
  0x10   :  { %837 = dma.done.wait [#allocation3], 128  }
  0x11   :  { %838 = vsyncadd [#allocation3], 4294967168  ;;  %v840_v0 = vmov 0   ;;  %v841_v1 = vmov 0.0   ;;  %v895_v2 = vld [vmem:[%s1110_s0] sm:$0xff]  ;;  %v907_v4 = vld [vmem:[%s1111_s1 + $0x8] sm:$0xff]  }
  0x12   :  { %770 = vset.pattern.permute.xlu0 %v840_v0  ;;  %611 = vmatprep.subr.bf16.mxu0 %v841_v1  ;;  %v901_v3 = vld [vmem:[%s1111_s1] sm:$0xff]   ;;  %v842_v5 = vmov 8   ;;  %v916_v6 = vld [vmem:[%s1111_s1 + $0x10] sm:$0xff]   ;;  %v926_v7 = vld [vmem:[%s1111_s1 + $0x18] sm:$0xff]   ;;  %vm843_vm0 = vmmov 0   ;;  %v844_v11 = vmov 1  }
  0x13   :  { %631 = vmatprep.subr.bf16.mxu1 %v841_v1  ;;  %51 = vperm.xlu0 %770, %v895_v2   ;;  %v939_v8 = vld [vmem:[%s1111_s1 + $0x20] sm:$0xff]   ;;  %v948_v9 = vld [vmem:[%s1111_s1 + $0x28] sm:$0xff]   ;;  %v957_v10 = vld [vmem:[%s1111_s1 + $0x30] sm:$0xff]   ;;  %v845_v13 = vmov 9   ;;  %v846_v25 = vmov 2   ;;  %v847_v26 = vmov 10  }
  0x14   :  { %612 = vmatpush3.bf16.msra.mxu0 %v901_v3  ;;  %632 = vmatpush3.bf16.msra.mxu1 %v901_v3  ;;  %v967_v12 = vld [vmem:[%s1111_s1 + $0x38] sm:$0xff]   ;;  %v977_v14 = vld [vmem:[#allocation2] ss:$0 sm:$0xff]  ;;  %v980_v17 = vld [vmem:[#allocation2 + $0x2] ss:$0 sm:$0xff]  ;;  %v848_v40 = vmov 3  }
  0x15   :  { %613 = vmatprep.subr.bf16.mxu0 %v841_v1  ;;  %633 = vmatprep.subr.bf16.mxu1 %v841_v1  ;;  %v982_v18 = vld [vmem:[#allocation2 + $0x1] ss:$0 sm:$0xff]  ;;  %v849_v41 = vmov 11   ;;  %v850_v55 = vmov 4   ;;  %v851_v56 = vmov 12   ;;  %vm527_vm1 = vcmask 7168  }
  0x16   :  { %627 = vmatprep.mubr.msk.bf16.mxu0 %vm843_vm0, %v841_v1  ;;  %647 = vmatprep.mubr.msk.bf16.mxu1 %vm843_vm0, %v841_v1 }
  0x17   :  { %771 = vset.pattern.permute.xlu0 %v842_v5  ;;  %772 = vset.pattern.permute.xlu1 %v844_v11 }
  0x18   :  { %65 = vperm.xlu0 %771, %v895_v2   ;;  %614 = vmatpush3.bf16.msra.mxu0 %v907_v4 }
  0x19   :  { %634 = vmatpush3.bf16.msra.mxu1 %v907_v4  ;;  %615 = vmatprep.subr.bf16.mxu0 %v841_v1 }
  0x1a   :  { %635 = vmatprep.subr.bf16.mxu1 %v841_v1  ;;  %75 = vperm.xlu1 %772, %v895_v2  }
  0x1c   :  { %616 = vmatpush3.bf16.msra.mxu0 %v916_v6  ;;  %775 = vset.pattern.permute.xlu0 %v847_v26 }
  0x1d   :  { %617 = vmatprep.subr.bf16.mxu0 %v841_v1  ;;  %636 = vmatpush3.bf16.msra.mxu1 %v916_v6 }
  0x1e   :  { %637 = vmatprep.subr.bf16.mxu1 %v841_v1  ;;  %773 = vset.pattern.permute.xlu1 %v845_v13 }
  0x1f   :  { %81 = vperm.xlu1 %773, %v895_v2   ;;  %93 = vperm.xlu0 %775, %v895_v2  }
  0x20   :  { %618 = vmatpush3.bf16.msra.mxu0 %v926_v7 }
  0x21   :  { %619 = vmatprep.subr.bf16.mxu0 %v841_v1  ;;  %638 = vmatpush3.bf16.msra.mxu1 %v926_v7 }
  0x22   :  { %639 = vmatprep.subr.bf16.mxu1 %v841_v1 }
  0x23   :  { %774 = vset.pattern.permute.xlu1 %v846_v25  ;;  %778 = vset.pattern.permute.xlu0 %v850_v55 }
  0x24   :  { %620 = vmatpush3.bf16.msra.mxu0 %v939_v8  ;;  %87 = vperm.xlu1 %774, %v895_v2  }
  0x25   :  { %621 = vmatprep.subr.bf16.mxu0 %v841_v1  ;;  %640 = vmatpush3.bf16.msra.mxu1 %v939_v8 }
  0x26   :  { %641 = vmatprep.subr.bf16.mxu1 %v841_v1  ;;  %111 = vperm.xlu0 %778, %v895_v2  }
  0x28   :  { %622 = vmatpush3.bf16.msra.mxu0 %v948_v9  ;;  %776 = vset.pattern.permute.xlu1 %v848_v40  ;;  %v856_v40 = vmov 7  }
  0x29   :  { %623 = vmatprep.subr.bf16.mxu0 %v841_v1  ;;  %642 = vmatpush3.bf16.msra.mxu1 %v948_v9 }
  0x2a   :  { %643 = vmatprep.subr.bf16.mxu1 %v841_v1  ;;  %99 = vperm.xlu1 %776, %v895_v2  }
  0x2c   :  { %624 = vmatpush3.bf16.msra.mxu0 %v957_v10 }
  0x2d   :  { %625 = vmatprep.subr.bf16.mxu0 %v841_v1  ;;  %644 = vmatpush3.bf16.msra.mxu1 %v957_v10 }
  0x2e   :  { %645 = vmatprep.subr.bf16.mxu1 %v841_v1  ;;  %777 = vset.pattern.permute.xlu1 %v849_v41  ;;  %v857_v41 = vmov 15  }
  0x2f   :  { %105 = vperm.xlu1 %777, %v895_v2  }
  0x30   :  { %626 = vmatpush3.bf16.msra.mxu0 %v967_v12 }
  0x31   :  { %651 = vmatprep.subr.bf16.mxu0 %v841_v1  ;;  %646 = vmatpush3.bf16.msra.mxu1 %v967_v12 }
  0x32   :  { %671 = vmatprep.subr.bf16.mxu1 %v841_v1 }
  0x33   :  { %779 = vset.pattern.permute.xlu1 %v851_v56 }
  0x34   :  { %117 = vperm.xlu1 %779, %v895_v2  }
  0x92   :  { %v52_v15 = vpop.permute.xlu0 %51 }
  0x93   :  { %v58_v16 = vmul.f32 %v977_v14, %v52_v15 }
  0x95   :  { %v63_v20 = vadd.f32 %v980_v17, %v58_v16 }
  0x97   :  { %v66_v19 = vpop.permute.xlu0 %65 }
  0x98   :  { %v72_v21 = vmul.f32 %v982_v18, %v66_v19  ;;  %v852_v19 = vmov 5  }
  0x99   :  { %v76_v27 = vpop.permute.xlu1 %75  ;;  %780 = vset.pattern.permute.xlu1 %v852_v19 }
  0x9a   :  { %v73_v22 = vadd.f32 %v72_v21, %v63_v20  ;;  %v78_v28 = vmul.f32 %v977_v14, %v76_v27  ;;  %v853_v20 = vmov 13   ;;  %123 = vperm.xlu1 %780, %v895_v2  }
  0x9b   :  { %781 = vset.pattern.permute.xlu0 %v853_v20 }
  0x9c   :  { %795 = vtanh.f32 %v73_v22  ;;  %v79_v30 = vadd.f32 %v980_v17, %v78_v28  ;;  %129 = vperm.xlu0 %781, %v895_v2  }
  0x9e   :  { %v82_v29 = vpop.permute.xlu1 %81  ;;  %v94_v44 = vpop.permute.xlu0 %93 }
  0x9f   :  { %v84_v31 = vmul.f32 %v982_v18, %v82_v29  ;;  %v96_v46 = vmul.f32 %v982_v18, %v94_v44 }
  0xa0   :  { %784 = vset.pattern.permute.xlu0 %v856_v40 }
  0xa1   :  { %v85_v32 = vadd.f32 %v84_v31, %v79_v30  ;;  %147 = vperm.xlu0 %784, %v895_v2  }
  0xa3   :  { %v88_v42 = vpop.permute.xlu1 %87 }
  0xa4   :  { %v90_v43 = vmul.f32 %v977_v14, %v88_v42 }
  0xa5   :  { %v112_v21 = vpop.permute.xlu0 %111  ;;  %786 = vset.pattern.permute.xlu0 %v857_v41 }
  0xa6   :  { %v796_v23 = vpop.eup %795  ;;  %v91_v45 = vadd.f32 %v980_v17, %v90_v43  ;;  %v114_v22 = vmul.f32 %v977_v14, %v112_v21 }
  0xa7   :  { %v159_v24 = vpack.c.bf16 %v796_v23, %v796_v23 }
  0xa8   :  { %v97_v47 = vadd.f32 %v96_v46, %v91_v45 }
  0xa9   :  { %628 = vmatmul.mubr.bf16.vlgmr.msra.gmra.mrb[0].mxu0 %v159_v24  ;;  %v100_v57 = vpop.permute.xlu1 %99  ;;  %v115_v24 = vadd.f32 %v980_v17, %v114_v22 }
  0xaa   :  { %652 = vmatpush3.bf16.msra.mxu0 %v901_v3  ;;  %667 = vmatprep.mubr.msk.bf16.mxu0 %vm843_vm0, %v841_v1  ;;  %v102_v58 = vmul.f32 %v977_v14, %v100_v57 }
  0xab   :  { %653 = vmatprep.subr.bf16.mxu0 %v841_v1 }
  0xac   :  { %v103_v60 = vadd.f32 %v980_v17, %v102_v58 }
  0xae   :  { %654 = vmatpush3.bf16.msra.mxu0 %v907_v4  ;;  %v106_v59 = vpop.permute.xlu1 %105 }
  0xaf   :  { %655 = vmatprep.subr.bf16.mxu0 %v841_v1  ;;  %v108_v61 = vmul.f32 %v982_v18, %v106_v59 }
  0xb1   :  { %v109_v62 = vadd.f32 %v108_v61, %v103_v60 }
  0xb2   :  { %656 = vmatpush3.bf16.msra.mxu0 %v916_v6 }
  0xb3   :  { %657 = vmatprep.subr.bf16.mxu0 %v841_v1  ;;  %v118_v23 = vpop.permute.xlu1 %117 }
  0xb4   :  { %v120_v25 = vmul.f32 %v982_v18, %v118_v23 }
  0xb6   :  { %658 = vmatpush3.bf16.msra.mxu0 %v926_v7  ;;  %v121_v26 = vadd.f32 %v120_v25, %v115_v24 }
  0xb7   :  { %659 = vmatprep.subr.bf16.mxu0 %v841_v1 }
  0xba   :  { %660 = vmatpush3.bf16.msra.mxu0 %v939_v8 }
  0xbb   :  { %661 = vmatprep.subr.bf16.mxu0 %v841_v1 }
  0xbe   :  { %662 = vmatpush3.bf16.msra.mxu0 %v948_v9 }
  0xbf   :  { %663 = vmatprep.subr.bf16.mxu0 %v841_v1 }
  0xc2   :  { %664 = vmatpush3.bf16.msra.mxu0 %v957_v10 }
  0xc3   :  { %665 = vmatprep.subr.bf16.mxu0 %v841_v1 }
  0xc6   :  { %666 = vmatpush3.bf16.msra.mxu0 %v967_v12 }
  0xc7   :  { %691 = vmatprep.subr.bf16.mxu0 %v841_v1 }
 0x17c   :  { %v242_v33 = vpop.f32.mrb[0].mxu0 }
 0x17d   :  { %v248_v34 = vadd.f32 %v242_v33, %v85_v32  ;;  %v629_v35 = vpop.f32.mrb[1].mxu0 }
 0x17e   :  { %v245_v36 = vpop.f32.mrb[2].mxu0 }
 0x17f   :  { %797 = vtanh.f32 %v248_v34  ;;  %v630_v37 = vpop.f32.mrb[3].mxu0 }
 0x189   :  { %v798_v38 = vpop.eup %797 }
 0x18a   :  { %v250_v39 = vpack.c.bf16 %v798_v38, %v798_v38 }
 0x18c   :  { %648 = vmatmul.mubr.bf16.vlgmr.msra.gmra.mrb[0].mxu1 %v250_v39 }
 0x18d   :  { %672 = vmatpush3.bf16.msra.mxu1 %v901_v3  ;;  %687 = vmatprep.mubr.msk.bf16.mxu1 %vm843_vm0, %v841_v1 }
 0x18e   :  { %673 = vmatprep.subr.bf16.mxu1 %v841_v1 }
 0x191   :  { %674 = vmatpush3.bf16.msra.mxu1 %v907_v4 }
 0x192   :  { %675 = vmatprep.subr.bf16.mxu1 %v841_v1 }
 0x195   :  { %676 = vmatpush3.bf16.msra.mxu1 %v916_v6 }
 0x196   :  { %677 = vmatprep.subr.bf16.mxu1 %v841_v1 }
 0x199   :  { %678 = vmatpush3.bf16.msra.mxu1 %v926_v7 }
 0x19a   :  { %679 = vmatprep.subr.bf16.mxu1 %v841_v1 }
 0x19d   :  { %680 = vmatpush3.bf16.msra.mxu1 %v939_v8 }
 0x19e   :  { %681 = vmatprep.subr.bf16.mxu1 %v841_v1 }
 0x1a1   :  { %682 = vmatpush3.bf16.msra.mxu1 %v948_v9 }
 0x1a2   :  { %683 = vmatprep.subr.bf16.mxu1 %v841_v1 }
 0x1a5   :  { %684 = vmatpush3.bf16.msra.mxu1 %v957_v10 }
 0x1a6   :  { %685 = vmatprep.subr.bf16.mxu1 %v841_v1 }
 0x1a9   :  { %686 = vmatpush3.bf16.msra.mxu1 %v967_v12 }
 0x1aa   :  { %711 = vmatprep.subr.bf16.mxu1 %v841_v1 }
 0x25f   :  { %v285_v48 = vpop.f32.mrb[0].mxu1 }
 0x260   :  { %v291_v49 = vadd.f32 %v285_v48, %v97_v47  ;;  %v649_v50 = vpop.f32.mrb[1].mxu1 }
 0x261   :  { %v288_v51 = vpop.f32.mrb[2].mxu1 }
 0x262   :  { %799 = vtanh.f32 %v291_v49  ;;  %v650_v52 = vpop.f32.mrb[3].mxu1 }
 0x26c   :  { %v800_v53 = vpop.eup %799 }
 0x26d   :  { %v293_v54 = vpack.c.bf16 %v800_v53, %v800_v53 }
 0x26f   :  { %668 = vmatmul.mubr.bf16.vlgmr.msra.gmra.mrb[4].mxu0 %v293_v54 }
 0x270   :  { %692 = vmatpush3.bf16.msra.mxu0 %v901_v3  ;;  %707 = vmatprep.mubr.msk.bf16.mxu0 %vm843_vm0, %v841_v1 }
 0x271   :  { %693 = vmatprep.subr.bf16.mxu0 %v841_v1 }
 0x274   :  { %694 = vmatpush3.bf16.msra.mxu0 %v907_v4 }
 0x275   :  { %695 = vmatprep.subr.bf16.mxu0 %v841_v1 }
 0x278   :  { %696 = vmatpush3.bf16.msra.mxu0 %v916_v6 }
 0x279   :  { %697 = vmatprep.subr.bf16.mxu0 %v841_v1 }
 0x27c   :  { %698 = vmatpush3.bf16.msra.mxu0 %v926_v7 }
 0x27d   :  { %699 = vmatprep.subr.bf16.mxu0 %v841_v1 }
 0x280   :  { %700 = vmatpush3.bf16.msra.mxu0 %v939_v8 }
 0x281   :  { %701 = vmatprep.subr.bf16.mxu0 %v841_v1 }
 0x284   :  { %702 = vmatpush3.bf16.msra.mxu0 %v948_v9 }
 0x285   :  { %703 = vmatprep.subr.bf16.mxu0 %v841_v1 }
 0x288   :  { %704 = vmatpush3.bf16.msra.mxu0 %v957_v10 }
 0x289   :  { %705 = vmatprep.subr.bf16.mxu0 %v841_v1 }
 0x28c   :  { %706 = vmatpush3.bf16.msra.mxu0 %v967_v12 }
 0x28d   :  { %731 = vmatprep.subr.bf16.mxu0 %v841_v1 }
 0x342   :  { %v328_v63 = vpop.f32.mrb[4].mxu0 }
 0x343   :  { %v334_v0 = vadd.f32 %v328_v63, %v109_v62  ;;  %v669_v5 = vpop.f32.mrb[5].mxu0 }
 0x344   :  { %v331_v11 = vpop.f32.mrb[6].mxu0 }
 0x345   :  { %801 = vtanh.f32 %v334_v0  ;;  %v670_v13 = vpop.f32.mrb[7].mxu0  ;;  %v545_v11 = vld [vmem:[#allocation2 + $0x3] ss:$0 sm:$0xff] }
 0x34f   :  { %v802_v15 = vpop.eup %801 }
 0x350   :  { %v336_v16 = vpack.c.bf16 %v802_v15, %v802_v15 }
 0x352   :  { %688 = vmatmul.mubr.bf16.vlgmr.msra.gmra.mrb[4].mxu1 %v336_v16  ;;  %v546_v16 = vld [vmem:[#allocation2 + $0x4] ss:$0 sm:$0xff] }
 0x353   :  { %712 = vmatpush3.bf16.msra.mxu1 %v901_v3  ;;  %727 = vmatprep.mubr.msk.bf16.mxu1 %vm843_vm0, %v841_v1 }
 0x354   :  { %713 = vmatprep.subr.bf16.mxu1 %v841_v1 }
 0x357   :  { %714 = vmatpush3.bf16.msra.mxu1 %v907_v4 }
 0x358   :  { %715 = vmatprep.subr.bf16.mxu1 %v841_v1 }
 0x35b   :  { %716 = vmatpush3.bf16.msra.mxu1 %v916_v6 }
 0x35c   :  { %717 = vmatprep.subr.bf16.mxu1 %v841_v1 }
 0x35f   :  { %718 = vmatpush3.bf16.msra.mxu1 %v926_v7 }
 0x360   :  { %719 = vmatprep.subr.bf16.mxu1 %v841_v1 }
 0x363   :  { %720 = vmatpush3.bf16.msra.mxu1 %v939_v8 }
 0x364   :  { %721 = vmatprep.subr.bf16.mxu1 %v841_v1 }
 0x367   :  { %722 = vmatpush3.bf16.msra.mxu1 %v948_v9 }
 0x368   :  { %723 = vmatprep.subr.bf16.mxu1 %v841_v1 }
 0x36b   :  { %724 = vmatpush3.bf16.msra.mxu1 %v957_v10 }
 0x36c   :  { %725 = vmatprep.subr.bf16.mxu1 %v841_v1 }
 0x36f   :  { %726 = vmatpush3.bf16.msra.mxu1 %v967_v12 }
 0x425   :  { %v371_v27 = vpop.f32.mrb[4].mxu1 }
 0x426   :  { %v377_v28 = vadd.f32 %v371_v27, %v121_v26  ;;  %v689_v29 = vpop.f32.mrb[5].mxu1 }
 0x427   :  { %v374_v30 = vpop.f32.mrb[6].mxu1 }
 0x428   :  { %803 = vtanh.f32 %v377_v28  ;;  %v690_v31 = vpop.f32.mrb[7].mxu1 }
 0x432   :  { %v804_v32 = vpop.eup %803 }
 0x433   :  { %v379_v33 = vpack.c.bf16 %v804_v32, %v804_v32 }
 0x435   :  { %708 = vmatmul.mubr.bf16.vlgmr.msra.gmra.mrb[8].mxu0 %v379_v33 }
 0x436   :  { %732 = vmatpush3.bf16.msra.mxu0 %v901_v3  ;;  %747 = vmatprep.mubr.msk.bf16.mxu0 %vm843_vm0, %v841_v1  ;;  %v854_v3 = vmov 6  }
 0x437   :  { %733 = vmatprep.subr.bf16.mxu0 %v841_v1  ;;  %782 = vset.pattern.permute.xlu1 %v854_v3 }
 0x438   :  { %135 = vperm.xlu1 %782, %v895_v2  }
 0x43a   :  { %734 = vmatpush3.bf16.msra.mxu0 %v907_v4  ;;  %v855_v4 = vmov 14  }
 0x43b   :  { %735 = vmatprep.subr.bf16.mxu0 %v841_v1 }
 0x43c   :  { %783 = vset.pattern.permute.xlu1 %v855_v4 }
 0x43d   :  { %141 = vperm.xlu1 %783, %v895_v2  }
 0x43e   :  { %736 = vmatpush3.bf16.msra.mxu0 %v916_v6  ;;  %v124_v6 = vpop.permute.xlu1 %123 }
 0x43f   :  { %737 = vmatprep.subr.bf16.mxu0 %v841_v1 }
 0x441   :  { %785 = vset.pattern.permute.xlu1 %v857_v41 }
 0x442   :  { %738 = vmatpush3.bf16.msra.mxu0 %v926_v7  ;;  %v126_v7 = vmul.f32 %v977_v14, %v124_v6  ;;  %153 = vperm.xlu1 %785, %v895_v2  }
 0x443   :  { %739 = vmatprep.subr.bf16.mxu0 %v841_v1 }
 0x446   :  { %740 = vmatpush3.bf16.msra.mxu0 %v939_v8  ;;  %v130_v8 = vpop.permute.xlu0 %129 }
 0x447   :  { %741 = vmatprep.subr.bf16.mxu0 %v841_v1 }
 0x44a   :  { %742 = vmatpush3.bf16.msra.mxu0 %v948_v9  ;;  %v127_v9 = vadd.f32 %v980_v17, %v126_v7  ;;  %v148_v2 = vpop.permute.xlu0 %147 }
 0x44b   :  { %743 = vmatprep.subr.bf16.mxu0 %v841_v1  ;;  %v150_v55 = vmul.f32 %v977_v14, %v148_v2 }
 0x44d   :  { %v151_v57 = vadd.f32 %v980_v17, %v150_v55 }
 0x44e   :  { %744 = vmatpush3.bf16.msra.mxu0 %v957_v10  ;;  %v132_v10 = vmul.f32 %v982_v18, %v130_v8 }
 0x44f   :  { %745 = vmatprep.subr.bf16.mxu0 %v841_v1 }
 0x450   :  { %v133_v34 = vadd.f32 %v132_v10, %v127_v9 }
 0x452   :  { %746 = vmatpush3.bf16.msra.mxu0 %v967_v12 }
 0x4b7   :  { %v136_v42 = vpop.permute.xlu1 %135 }
 0x4b8   :  { %v138_v43 = vmul.f32 %v977_v14, %v136_v42 }
 0x4ba   :  { %v139_v45 = vadd.f32 %v980_v17, %v138_v43 }
 0x4bc   :  { %v142_v44 = vpop.permute.xlu1 %141 }
 0x4bd   :  { %v144_v46 = vmul.f32 %v982_v18, %v142_v44 }
 0x4bf   :  { %v145_v47 = vadd.f32 %v144_v46, %v139_v45 }
 0x4c1   :  { %v154_v56 = vpop.permute.xlu1 %153 }
 0x4c2   :  { %v156_v58 = vmul.f32 %v982_v18, %v154_v56 }
 0x4c4   :  { %v157_v59 = vadd.f32 %v156_v58, %v151_v57 }
 0x508   :  { %v414_v1 = vpop.f32.mrb[8].mxu0 }
 0x509   :  { %v420_v35 = vadd.f32 %v414_v1, %v133_v34  ;;  %v709_v12 = vpop.f32.mrb[9].mxu0 }
 0x50a   :  { %v417_v36 = vpop.f32.mrb[10].mxu0 }
 0x50b   :  { %805 = vtanh.f32 %v420_v35  ;;  %v710_v37 = vpop.f32.mrb[11].mxu0 }
 0x515   :  { %v806_v38 = vpop.eup %805 }
 0x516   :  { %v422_v39 = vpack.c.bf16 %v806_v38, %v806_v38 }
 0x518   :  { %728 = vmatmul.mubr.bf16.vlgmr.msra.gmra.mrb[8].mxu1 %v422_v39 }
 0x5eb   :  { %v457_v48 = vpop.f32.mrb[8].mxu1 }
 0x5ec   :  { %v463_v49 = vadd.f32 %v457_v48, %v145_v47  ;;  %v729_v50 = vpop.f32.mrb[9].mxu1 }
 0x5ed   :  { %v460_v51 = vpop.f32.mrb[10].mxu1 }
 0x5ee   :  { %807 = vtanh.f32 %v463_v49  ;;  %v730_v52 = vpop.f32.mrb[11].mxu1 }
 0x5f8   :  { %v808_v53 = vpop.eup %807 }
 0x5f9   :  { %v465_v54 = vpack.c.bf16 %v808_v53, %v808_v53 }
 0x5fb   :  { %748 = vmatmul.mubr.bf16.vlgmr.msra.gmra.mrb[12].mxu0 %v465_v54 }
 0x6ce   :  { %v500_v60 = vpop.f32.mrb[12].mxu0 }
 0x6cf   :  { %v506_v61 = vadd.f32 %v500_v60, %v157_v59  ;;  %v749_v62 = vpop.f32.mrb[13].mxu0 }
 0x6d0   :  { %v503_v63 = vpop.f32.mrb[14].mxu0 }
 0x6d1   :  { %809 = vtanh.f32 %v506_v61  ;;  %v750_v0 = vpop.f32.mrb[15].mxu0 }
 0x6db   :  { %v810_v5 = vpop.eup %809 }
 0x6dc   :  { %v508_v13 = vmax.f32 %v810_v5, 0.0 }
 0x6de   :  { %v513_v15 = vmul.f32 %v545_v11, %v508_v13 }
 0x6e0   :  { %514 = vadd.xlane.f32.xlu1 %v513_v15 }
 0x76d   :  { %v515_v19 = vpop.xlane.xlu1 %514 }
 0x76e   :  { %v520_v14 = vadd.f32 %v546_v16, %v515_v19 }
 0x770   :  { %v547_v20 = vmul.f32 -1.442695, %v520_v14 }
 0x772   :  { %811 = vpow2.f32 %v547_v20 }
 0x77c   :  { %v812_v17 = vpop.eup %811 }
 0x77d   :  { %v524_v21 = vadd.f32 1.0, %v812_v17 }
 0x77f   :  { %813 = vrcp.f32 %v524_v21 }
 0x789   :  { %v814_v18 = vpop.eup %813 }
 0x78a   :  { %528 = vst.msk [vmem:[%s1113_s3] sm:$0xff] %vm527_vm1, %v814_v18 }
 0x78b   :  { %533 = vsyncpa [#allocation3], 1 }

</bundles_post_ra>
